<compile_context>
chip_gen: v5e
topology: v5e:2x2
jax: 0.10.0
libtpu: 0.0.40
codegen_flags: <defaults>
</compile_context>

<pallas_src>
import functools
import math

import jax
import jax.numpy as jnp
from jax.experimental import pallas as pl
from jax.experimental.pallas import tpu as pltpu


LN_EPS = 1e-5


def _round_up(n, m):
    return ((n + m - 1) // m) * m


def _layernorm_f32(v, gamma, beta, eps=LN_EPS):
    # Single-pass stats: mean and mean-of-squares are two independent
    # cross-lane reductions (no serialized XLU chain); all math in f32.
    v = v.astype(jnp.float32)
    mu = jnp.mean(v, axis=-1, keepdims=True)
    ms = jnp.mean(v * v, axis=-1, keepdims=True)
    var = jnp.maximum(ms - mu * mu, 0.0)
    return (v - mu) * jax.lax.rsqrt(var + eps) * gamma + beta


def shap_attention_kernel(
    # batch-tiled activations (tb rows per grid step, f32)
    x_ref, shap_ref,
    # VMEM-resident matmul weights (constant index_map, compute_dtype)
    wf_ref, ws_ref, wvo_ref,
    # VMEM-resident per-row vectors, concatenated (f32)
    vin_ref,   # (2, Din):  [in_g, in_b]
    vdh_ref,   # (10, Dh):  [bf, fg, fb, bs, sg, sb, bvo, og, ob, scale]
    # output tile
    out_ref,
    *, approximate_gelu,
):
    in_g, in_b = vin_ref[0:1, :], vin_ref[1:2, :]
    bf, fg, fb = vdh_ref[0:1, :], vdh_ref[1:2, :], vdh_ref[2:3, :]
    bs, sg, sb = vdh_ref[3:4, :], vdh_ref[4:5, :], vdh_ref[5:6, :]
    bvo, og, ob = vdh_ref[6:7, :], vdh_ref[7:8, :], vdh_ref[8:9, :]
    scale = vdh_ref[9:10, :]

    # --- input_norm (f32 statistics on the untouched f32 input) ---
    xn = _layernorm_f32(x_ref[...], in_g, in_b)

    # --- feature_proj: Linear -> GELU -> LayerNorm ---
    h = jnp.dot(xn.astype(wf_ref.dtype), wf_ref[...],
                preferred_element_type=jnp.float32) + bf
    if approximate_gelu:
        # tanh-approx GELU -> EUP tanh (slight deviation from exact nn.GELU).
        c = 0.7978845608028654  # sqrt(2/pi)
        h = 0.5 * h * (1.0 + jnp.tanh(c * (h + 0.044715 * h * h * h)))
    else:
        # Exact erf-based GELU (matches PyTorch nn.GELU() default).
        h = 0.5 * h * (1.0 + jax.lax.erf(h * (1.0 / math.sqrt(2.0))))
    x_proj = _layernorm_f32(h, fg, fb)

    # --- shap_proj: Linear -> LayerNorm -> Dropout (identity in eval) ---
    s = jnp.dot(shap_ref[...].astype(ws_ref.dtype), ws_ref[...],
                preferred_element_type=jnp.float32) + bs
    shap_proj = _layernorm_f32(s, sg, sb)
    # TODO(synk): training-mode dropout (p=0.1) not implemented; eval semantics.

    # --- gating: x_proj * (1 + shap_scale * sigmoid(shap_proj)) ---
    # sigmoid(x) == 0.5*(tanh(x/2)+1): exact identity, uses the EUP tanh slot.
    gate = 0.5 * (jnp.tanh(0.5 * shap_proj) + 1.0)
    x_comb = x_proj * (1.0 + scale * gate)

    # --- MultiheadAttention with seq_len == 1 (softmax over one key == 1) ---
    #   ((x_comb @ Wv + bv) @ Wo + bo) == x_comb @ (Wv @ Wo) + (bv @ Wo + bo)
    attn_out = jnp.dot(x_comb.astype(wvo_ref.dtype), wvo_ref[...],
                       preferred_element_type=jnp.float32) + bvo

    # --- residual + final LayerNorm ---
    out = _layernorm_f32(attn_out + x_proj, og, ob)
    out_ref[...] = out.astype(out_ref.dtype)


def prepare_params(params, *, compute_dtype=jnp.bfloat16):
    """One-time parameter preprocessing (call once, outside the jitted forward).

    Folds the dead q/k/softmax path (Wv @ Wo, bvo), casts matmul weights to the
    compute dtype, and packs the 12 per-row vectors into two resident arrays.
    """
    f32 = jnp.float32
    wo = params["wo"].astype(f32)
    wvo = params["wv"].astype(f32) @ wo
    bvo = params["bv"].astype(f32).reshape(1, -1) @ wo \
        + params["bo"].astype(f32).reshape(1, -1)
    Dh = wo.shape[1]
    scale_row = jnp.broadcast_to(
        params["shap_scale"].astype(f32).reshape(1, 1), (1, Dh))

    def row(v):
        return v.astype(f32).reshape(1, -1)

    vin = jnp.concatenate([row(params["in_g"]), row(params["in_b"])], axis=0)
    vdh = jnp.concatenate(
        [row(params["bf"]), row(params["fg"]), row(params["fb"]),
         row(params["bs"]), row(params["sg"]), row(params["sb"]),
         bvo, row(params["og"]), row(params["ob"]), scale_row], axis=0)

    return dict(
        wf=params["wf"].astype(compute_dtype),
        ws=params["ws"].astype(compute_dtype),
        wvo=wvo.astype(compute_dtype),
        vin=vin,
        vdh=vdh,
    )


def shap_attention_forward(x, shap_weights, prepared, *, block_b=1024,
                           approximate_gelu=False):
    B, Din = x.shape
    Ds = shap_weights.shape[1]
    Dh = prepared["wf"].shape[1]
    w_bytes = jnp.dtype(prepared["wf"].dtype).itemsize

    # --- row-tile selection (multiple of 8; no activation pad pass) ---
    tb = max(8, _round_up(min(block_b, _round_up(B, 8)), 8))
    # v7x megacore: guarantee >= 2 grid steps so both TensorCores get work.
    if B > 8 and pl.cdiv(B, tb) < 2:
        tb = max(8, _round_up(pl.cdiv(B, 2), 8))

    def vmem_budget(t):
        act = 2 * t * (Din + Ds + Dh) * 4                       # x/shap/out, 2 bufs
        wts = 2 * (Din * Dh + Ds * Dh + Dh * Dh) * w_bytes      # resident weights
        vec = 2 * (2 * Din + 10 * Dh) * 4                       # packed row vectors
        return act + wts + vec

    # Shrink the tile until the double-buffered working set fits comfortably
    # inside every generation's scoped VMEM (v7x has only 64 MiB total).
    VMEM_TARGET = 48 << 20
    while tb > 8 and vmem_budget(tb) > VMEM_TARGET:
        tb = max(8, _round_up(tb // 2, 8))
    # TODO(synk): if weights alone exceed the budget (very large Din/Dh), add a
    # K-grid axis with an accumulator instead of keeping wf fully resident.

    grid = pl.cdiv(B, tb)  # ragged last block: reads padded, writes masked
    vmem_limit = int(max(vmem_budget(tb) + (4 << 20), 32 << 20))

    def act_spec(d):
        return pl.BlockSpec((tb, d), lambda i: (i, 0))

    def resident(shape):
        nd = len(shape)
        return pl.BlockSpec(shape, lambda i, _nd=nd: (0,) * _nd)

    in_specs = [
        act_spec(Din),          # x tile
        act_spec(Ds),           # shap tile
        resident((Din, Dh)),    # wf
        resident((Ds, Dh)),     # ws
        resident((Dh, Dh)),     # wvo
        resident((2, Din)),     # vin  (in_g, in_b)
        resident((10, Dh)),     # vdh  (bf,fg,fb,bs,sg,sb,bvo,og,ob,scale)
    ]
    out_specs = pl.BlockSpec((tb, Dh), lambda i: (i, 0))

    kernel = functools.partial(shap_attention_kernel,
                               approximate_gelu=approximate_gelu)

    out = pl.pallas_call(
        kernel,
        out_shape=jax.ShapeDtypeStruct((B, Dh), jnp.float32),
        grid_spec=pltpu.PrefetchScalarGridSpec(
            num_scalar_prefetch=0,
            grid=(grid,),
            in_specs=in_specs,
            out_specs=out_specs,
        ),
        compiler_params=pltpu.CompilerParams(
            dimension_semantics=("parallel",),
            vmem_limit_bytes=vmem_limit,
        ),
    )(
        x, shap_weights,
        prepared["wf"], prepared["ws"], prepared["wvo"],
        prepared["vin"], prepared["vdh"],
    )

    # PyTorch attn_weights (average_attn_weights=True): softmax over a single
    # key == 1.0 for every head, so the averaged weights are exactly 1.0.
    attn_w = jnp.ones((B, 1, 1), jnp.float32)
    return out, attn_w


def make_params(key, input_dim, shap_dim, hidden_dim):
    ks = jax.random.split(key, 8)
    f32 = jnp.float32
    # Weights are stored (in_features, out_features).
    wf = jax.random.normal(ks[0], (input_dim, hidden_dim), f32) * math.sqrt(
        2.0 / (input_dim + hidden_dim))
    ws = jax.random.normal(ks[1], (shap_dim, hidden_dim), f32) * math.sqrt(
        2.0 / shap_dim)
    # Full MHA in_proj (q/k slices are mathematically dead for seq_len == 1
    # but are kept to mirror the PyTorch module's parameterization).
    in_proj = jax.random.normal(ks[2], (hidden_dim, 3 * hidden_dim), f32) * math.sqrt(
        1.0 / hidden_dim)
    wo = jax.random.normal(ks[3], (hidden_dim, hidden_dim), f32) * math.sqrt(
        1.0 / hidden_dim)
    bq = jax.random.normal(ks[4], (1, hidden_dim), f32) * 0.02
    bk = jax.random.normal(ks[5], (1, hidden_dim), f32) * 0.02
    bv = jax.random.normal(ks[6], (1, hidden_dim), f32) * 0.02
    bo = jax.random.normal(ks[7], (1, hidden_dim), f32) * 0.02

    return dict(
        shap_scale=jnp.ones((1,), f32),
        in_g=jnp.ones((1, input_dim), f32), in_b=jnp.zeros((1, input_dim), f32),
        wf=wf, bf=jnp.zeros((1, hidden_dim), f32),
        fg=jnp.ones((1, hidden_dim), f32), fb=jnp.zeros((1, hidden_dim), f32),
        ws=ws, bs=jnp.zeros((1, hidden_dim), f32),
        sg=jnp.ones((1, hidden_dim), f32), sb=jnp.zeros((1, hidden_dim), f32),
        wq=in_proj[:, 0 * hidden_dim:1 * hidden_dim], bq=bq,
        wk=in_proj[:, 1 * hidden_dim:2 * hidden_dim], bk=bk,
        wv=in_proj[:, 2 * hidden_dim:3 * hidden_dim], bv=bv,
        wo=wo, bo=bo,
        og=jnp.ones((1, hidden_dim), f32), ob=jnp.zeros((1, hidden_dim), f32),
    )


def reference_forward(x, shap, p):
    """Pure-JAX f32 reference (eval-mode), for sanity checking."""
    def ln(v, g, b):
        mu = jnp.mean(v, axis=-1, keepdims=True)
        var = jnp.mean((v - mu) ** 2, axis=-1, keepdims=True)
        return (v - mu) * jax.lax.rsqrt(var + LN_EPS) * g + b

    xn = ln(x, p["in_g"], p["in_b"])
    h = xn @ p["wf"] + p["bf"]
    h = 0.5 * h * (1.0 + jax.lax.erf(h / math.sqrt(2.0)))
    x_proj = ln(h, p["fg"], p["fb"])
    sp = ln(shap @ p["ws"] + p["bs"], p["sg"], p["sb"])
    x_comb = x_proj * (1.0 + p["shap_scale"][0] * jax.nn.sigmoid(sp))
    v = x_comb @ p["wv"] + p["bv"]          # softmax over 1 key == 1
    attn_out = v @ p["wo"] + p["bo"]
    out = ln(attn_out + x_proj, p["og"], p["ob"])
    return out, jnp.ones((x.shape[0], 1, 1), jnp.float32)


if __name__ == "__main__":
    B, input_dim, shap_dim, hidden_dim = 16, 256, 256, 128

    key = jax.random.PRNGKey(0)
    kx, ks, kp = jax.random.split(key, 3)
    x = jax.random.normal(kx, (B, input_dim), jnp.float32)
    shap_weights = jax.random.normal(ks, (B, shap_dim), jnp.float32)
    params = make_params(kp, input_dim, shap_dim, hidden_dim)

    ref_out, ref_w = reference_forward(x, shap_weights, params)

    # --- f32 matmul-weight path (tight tolerance); default tb logic splits the
    #     16-row batch into two 8-row grid steps, exercising pipelining. ---
    prep_f32 = prepare_params(params, compute_dtype=jnp.float32)
    fwd_f32 = jax.jit(functools.partial(shap_attention_forward))
    out, attn_w = fwd_f32(x, shap_weights, prep_f32)
    out = jax.block_until_ready(out)
    attn_w = jax.block_until_ready(attn_w)
    assert out.shape == (B, hidden_dim) and attn_w.shape == (B, 1, 1)
    assert jnp.allclose(out, ref_out, atol=2e-4, rtol=2e-4)
    assert jnp.allclose(attn_w, ref_w, atol=1e-6)

    # --- ragged batch (no pad; last block masked) ---
    Br = 13
    out_r, _ = fwd_f32(x[:Br], shap_weights[:Br], prep_f32)
    out_r = jax.block_until_ready(out_r)
    assert out_r.shape == (Br, hidden_dim)
    assert jnp.allclose(out_r, ref_out[:Br], atol=2e-4, rtol=2e-4)

    # --- default bf16 matmul-weight path (MXU-native); looser tolerance ---
    prep_bf16 = prepare_params(params)          # compute_dtype=bf16 default
    fwd_bf16 = jax.jit(shap_attention_forward)
    out_bf16, _ = fwd_bf16(x, shap_weights, prep_bf16)
    out_bf16 = jax.block_until_ready(out_bf16)
    assert jnp.allclose(out_bf16, ref_out, atol=1e-1, rtol=1e-1)

    print("KERNEL_OK")
</pallas_src>

<mosaic_0001>
module attributes {stable_mosaic.version = 11 : i64} {
  func.func @shap_attention_kernel(%arg0: i32, %arg1: memref<8x256xf32, #tpu.memory_space<vmem>>, %arg2: memref<8x256xf32, #tpu.memory_space<vmem>>, %arg3: memref<256x128xf32, #tpu.memory_space<vmem>>, %arg4: memref<256x128xf32, #tpu.memory_space<vmem>>, %arg5: memref<128x128xf32, #tpu.memory_space<vmem>>, %arg6: memref<2x256xf32, #tpu.memory_space<vmem>>, %arg7: memref<10x128xf32, #tpu.memory_space<vmem>>, %arg8: memref<8x128xf32, #tpu.memory_space<vmem>>) attributes {dimension_semantics = [#tpu.dimension_semantics<parallel>], iteration_bounds = array<i64: 2>, scalar_prefetch = 0 : i64, scratch_operands = 0 : i64, tpu.core_type = #tpu.core_type<tc>, window_params = [{transform_indices = @transform_0, window_bounds = array<i64: 8, 256>}, {transform_indices = @transform_1, window_bounds = array<i64: 8, 256>}, {pipeline_mode = #tpu.pipeline_mode<synchronous>, transform_indices = @transform_2, window_bounds = array<i64: 256, 128>}, {pipeline_mode = #tpu.pipeline_mode<synchronous>, transform_indices = @transform_3, window_bounds = array<i64: 256, 128>}, {pipeline_mode = #tpu.pipeline_mode<synchronous>, transform_indices = @transform_4, window_bounds = array<i64: 128, 128>}, {pipeline_mode = #tpu.pipeline_mode<synchronous>, transform_indices = @transform_5, window_bounds = array<i64: 2, 256>}, {pipeline_mode = #tpu.pipeline_mode<synchronous>, transform_indices = @transform_6, window_bounds = array<i64: 10, 128>}, {transform_indices = @transform_7, window_bounds = array<i64: 8, 128>}]} {
    %c0 = arith.constant 0 : index
    %c0_0 = arith.constant 0 : index
    %0 = vector.load %arg6[%c0, %c0_0] : memref<2x256xf32, #tpu.memory_space<vmem>>, vector<1x256xf32>
    %c1 = arith.constant 1 : index
    %c0_1 = arith.constant 0 : index
    %1 = vector.load %arg6[%c1, %c0_1] : memref<2x256xf32, #tpu.memory_space<vmem>>, vector<1x256xf32>
    %c0_2 = arith.constant 0 : index
    %c0_3 = arith.constant 0 : index
    %2 = vector.load %arg7[%c0_2, %c0_3] : memref<10x128xf32, #tpu.memory_space<vmem>>, vector<1x128xf32>
    %c1_4 = arith.constant 1 : index
    %c0_5 = arith.constant 0 : index
    %3 = vector.load %arg7[%c1_4, %c0_5] : memref<10x128xf32, #tpu.memory_space<vmem>>, vector<1x128xf32>
    %c2 = arith.constant 2 : index
    %c0_6 = arith.constant 0 : index
    %4 = vector.load %arg7[%c2, %c0_6] : memref<10x128xf32, #tpu.memory_space<vmem>>, vector<1x128xf32>
    %c3 = arith.constant 3 : index
    %c0_7 = arith.constant 0 : index
    %5 = vector.load %arg7[%c3, %c0_7] : memref<10x128xf32, #tpu.memory_space<vmem>>, vector<1x128xf32>
    %c4 = arith.constant 4 : index
    %c0_8 = arith.constant 0 : index
    %6 = vector.load %arg7[%c4, %c0_8] : memref<10x128xf32, #tpu.memory_space<vmem>>, vector<1x128xf32>
    %c5 = arith.constant 5 : index
    %c0_9 = arith.constant 0 : index
    %7 = vector.load %arg7[%c5, %c0_9] : memref<10x128xf32, #tpu.memory_space<vmem>>, vector<1x128xf32>
    %c6 = arith.constant 6 : index
    %c0_10 = arith.constant 0 : index
    %8 = vector.load %arg7[%c6, %c0_10] : memref<10x128xf32, #tpu.memory_space<vmem>>, vector<1x128xf32>
    %c7 = arith.constant 7 : index
    %c0_11 = arith.constant 0 : index
    %9 = vector.load %arg7[%c7, %c0_11] : memref<10x128xf32, #tpu.memory_space<vmem>>, vector<1x128xf32>
    %c8 = arith.constant 8 : index
    %c0_12 = arith.constant 0 : index
    %10 = vector.load %arg7[%c8, %c0_12] : memref<10x128xf32, #tpu.memory_space<vmem>>, vector<1x128xf32>
    %c9 = arith.constant 9 : index
    %c0_13 = arith.constant 0 : index
    %11 = vector.load %arg7[%c9, %c0_13] : memref<10x128xf32, #tpu.memory_space<vmem>>, vector<1x128xf32>
    %c0_14 = arith.constant 0 : index
    %c0_15 = arith.constant 0 : index
    %12 = vector.load %arg1[%c0_14, %c0_15] : memref<8x256xf32, #tpu.memory_space<vmem>>, vector<8x256xf32>
    %cst = arith.constant dense<0.000000e+00> : vector<8xf32>
    %13 = vector.multi_reduction <add>, %12, %cst [1] : vector<8x256xf32> to vector<8xf32>
    %14 = vector.shape_cast %13 : vector<8xf32> to vector<8x1xf32>
    %cst_16 = arith.constant 2.560000e+02 : f32
    %15 = vector.broadcast %cst_16 : f32 to vector<8x1xf32>
    %16 = arith.divf %14, %15 : vector<8x1xf32>
    %17 = arith.mulf %12, %12 : vector<8x256xf32>
    %cst_17 = arith.constant dense<0.000000e+00> : vector<8xf32>
    %18 = vector.multi_reduction <add>, %17, %cst_17 [1] : vector<8x256xf32> to vector<8xf32>
    %19 = vector.shape_cast %18 : vector<8xf32> to vector<8x1xf32>
    %cst_18 = arith.constant 2.560000e+02 : f32
    %20 = vector.broadcast %cst_18 : f32 to vector<8x1xf32>
    %21 = arith.divf %19, %20 : vector<8x1xf32>
    %22 = arith.mulf %16, %16 : vector<8x1xf32>
    %23 = arith.subf %21, %22 : vector<8x1xf32>
    %cst_19 = arith.constant 0.000000e+00 : f32
    %24 = vector.broadcast %cst_19 : f32 to vector<8x1xf32>
    %25 = arith.maximumf %23, %24 : vector<8x1xf32>
    %26 = vector.broadcast %16 : vector<8x1xf32> to vector<8x256xf32>
    %27 = arith.subf %12, %26 : vector<8x256xf32>
    %cst_20 = arith.constant 9.99999974E-6 : f32
    %28 = vector.broadcast %cst_20 : f32 to vector<8x1xf32>
    %29 = arith.addf %25, %28 : vector<8x1xf32>
    %30 = math.rsqrt %29 : vector<8x1xf32>
    %31 = vector.broadcast %30 : vector<8x1xf32> to vector<8x256xf32>
    %32 = arith.mulf %27, %31 : vector<8x256xf32>
    %33 = vector.broadcast %0 : vector<1x256xf32> to vector<8x256xf32>
    %34 = arith.mulf %32, %33 : vector<8x256xf32>
    %35 = vector.broadcast %1 : vector<1x256xf32> to vector<8x256xf32>
    %36 = arith.addf %34, %35 : vector<8x256xf32>
    %c0_21 = arith.constant 0 : index
    %c0_22 = arith.constant 0 : index
    %37 = vector.load %arg3[%c0_21, %c0_22] : memref<256x128xf32, #tpu.memory_space<vmem>>, vector<256x128xf32>
    %cst_23 = arith.constant dense<0.000000e+00> : vector<8x128xf32>
    %38 = tpu.matmul %36, %37, %cst_23 {dimension_numbers = #tpu.dot_dimension_numbers<[1], [0], [0], [1], [0, 0, 1, 1], [], []>} : vector<8x256xf32>, vector<256x128xf32>, vector<8x128xf32> -> vector<8x128xf32>
    %39 = vector.broadcast %2 : vector<1x128xf32> to vector<8x128xf32>
    %40 = arith.addf %38, %39 : vector<8x128xf32>
    %cst_24 = arith.constant 5.000000e-01 : f32
    %41 = vector.broadcast %cst_24 : f32 to vector<8x128xf32>
    %42 = arith.mulf %41, %40 : vector<8x128xf32>
    %cst_25 = arith.constant 0.707106769 : f32
    %43 = vector.broadcast %cst_25 : f32 to vector<8x128xf32>
    %44 = arith.mulf %40, %43 : vector<8x128xf32>
    %45 = math.erf %44 : vector<8x128xf32>
    %cst_26 = arith.constant 1.000000e+00 : f32
    %46 = vector.broadcast %cst_26 : f32 to vector<8x128xf32>
    %47 = arith.addf %46, %45 : vector<8x128xf32>
    %48 = arith.mulf %42, %47 : vector<8x128xf32>
    %cst_27 = arith.constant dense<0.000000e+00> : vector<8xf32>
    %49 = vector.multi_reduction <add>, %48, %cst_27 [1] : vector<8x128xf32> to vector<8xf32>
    %50 = vector.shape_cast %49 : vector<8xf32> to vector<8x1xf32>
    %cst_28 = arith.constant 1.280000e+02 : f32
    %51 = vector.broadcast %cst_28 : f32 to vector<8x1xf32>
    %52 = arith.divf %50, %51 : vector<8x1xf32>
    %53 = arith.mulf %48, %48 : vector<8x128xf32>
    %cst_29 = arith.constant dense<0.000000e+00> : vector<8xf32>
    %54 = vector.multi_reduction <add>, %53, %cst_29 [1] : vector<8x128xf32> to vector<8xf32>
    %55 = vector.shape_cast %54 : vector<8xf32> to vector<8x1xf32>
    %cst_30 = arith.constant 1.280000e+02 : f32
    %56 = vector.broadcast %cst_30 : f32 to vector<8x1xf32>
    %57 = arith.divf %55, %56 : vector<8x1xf32>
    %58 = arith.mulf %52, %52 : vector<8x1xf32>
    %59 = arith.subf %57, %58 : vector<8x1xf32>
    %cst_31 = arith.constant 0.000000e+00 : f32
    %60 = vector.broadcast %cst_31 : f32 to vector<8x1xf32>
    %61 = arith.maximumf %59, %60 : vector<8x1xf32>
    %62 = vector.broadcast %52 : vector<8x1xf32> to vector<8x128xf32>
    %63 = arith.subf %48, %62 : vector<8x128xf32>
    %cst_32 = arith.constant 9.99999974E-6 : f32
    %64 = vector.broadcast %cst_32 : f32 to vector<8x1xf32>
    %65 = arith.addf %61, %64 : vector<8x1xf32>
    %66 = math.rsqrt %65 : vector<8x1xf32>
    %67 = vector.broadcast %66 : vector<8x1xf32> to vector<8x128xf32>
    %68 = arith.mulf %63, %67 : vector<8x128xf32>
    %69 = vector.broadcast %3 : vector<1x128xf32> to vector<8x128xf32>
    %70 = arith.mulf %68, %69 : vector<8x128xf32>
    %71 = vector.broadcast %4 : vector<1x128xf32> to vector<8x128xf32>
    %72 = arith.addf %70, %71 : vector<8x128xf32>
    %c0_33 = arith.constant 0 : index
    %c0_34 = arith.constant 0 : index
    %73 = vector.load %arg2[%c0_33, %c0_34] : memref<8x256xf32, #tpu.memory_space<vmem>>, vector<8x256xf32>
    %c0_35 = arith.constant 0 : index
    %c0_36 = arith.constant 0 : index
    %74 = vector.load %arg4[%c0_35, %c0_36] : memref<256x128xf32, #tpu.memory_space<vmem>>, vector<256x128xf32>
    %cst_37 = arith.constant dense<0.000000e+00> : vector<8x128xf32>
    %75 = tpu.matmul %73, %74, %cst_37 {dimension_numbers = #tpu.dot_dimension_numbers<[1], [0], [0], [1], [0, 0, 1, 1], [], []>} : vector<8x256xf32>, vector<256x128xf32>, vector<8x128xf32> -> vector<8x128xf32>
    %76 = vector.broadcast %5 : vector<1x128xf32> to vector<8x128xf32>
    %77 = arith.addf %75, %76 : vector<8x128xf32>
    %cst_38 = arith.constant dense<0.000000e+00> : vector<8xf32>
    %78 = vector.multi_reduction <add>, %77, %cst_38 [1] : vector<8x128xf32> to vector<8xf32>
    %79 = vector.shape_cast %78 : vector<8xf32> to vector<8x1xf32>
    %cst_39 = arith.constant 1.280000e+02 : f32
    %80 = vector.broadcast %cst_39 : f32 to vector<8x1xf32>
    %81 = arith.divf %79, %80 : vector<8x1xf32>
    %82 = arith.mulf %77, %77 : vector<8x128xf32>
    %cst_40 = arith.constant dense<0.000000e+00> : vector<8xf32>
    %83 = vector.multi_reduction <add>, %82, %cst_40 [1] : vector<8x128xf32> to vector<8xf32>
    %84 = vector.shape_cast %83 : vector<8xf32> to vector<8x1xf32>
    %cst_41 = arith.constant 1.280000e+02 : f32
    %85 = vector.broadcast %cst_41 : f32 to vector<8x1xf32>
    %86 = arith.divf %84, %85 : vector<8x1xf32>
    %87 = arith.mulf %81, %81 : vector<8x1xf32>
    %88 = arith.subf %86, %87 : vector<8x1xf32>
    %cst_42 = arith.constant 0.000000e+00 : f32
    %89 = vector.broadcast %cst_42 : f32 to vector<8x1xf32>
    %90 = arith.maximumf %88, %89 : vector<8x1xf32>
    %91 = vector.broadcast %81 : vector<8x1xf32> to vector<8x128xf32>
    %92 = arith.subf %77, %91 : vector<8x128xf32>
    %cst_43 = arith.constant 9.99999974E-6 : f32
    %93 = vector.broadcast %cst_43 : f32 to vector<8x1xf32>
    %94 = arith.addf %90, %93 : vector<8x1xf32>
    %95 = math.rsqrt %94 : vector<8x1xf32>
    %96 = vector.broadcast %95 : vector<8x1xf32> to vector<8x128xf32>
    %97 = arith.mulf %92, %96 : vector<8x128xf32>
    %98 = vector.broadcast %6 : vector<1x128xf32> to vector<8x128xf32>
    %99 = arith.mulf %97, %98 : vector<8x128xf32>
    %100 = vector.broadcast %7 : vector<1x128xf32> to vector<8x128xf32>
    %101 = arith.addf %99, %100 : vector<8x128xf32>
    %cst_44 = arith.constant 5.000000e-01 : f32
    %102 = vector.broadcast %cst_44 : f32 to vector<8x128xf32>
    %103 = arith.mulf %102, %101 : vector<8x128xf32>
    %104 = math.tanh %103 : vector<8x128xf32>
    %cst_45 = arith.constant 1.000000e+00 : f32
    %105 = vector.broadcast %cst_45 : f32 to vector<8x128xf32>
    %106 = arith.addf %104, %105 : vector<8x128xf32>
    %cst_46 = arith.constant 5.000000e-01 : f32
    %107 = vector.broadcast %cst_46 : f32 to vector<8x128xf32>
    %108 = arith.mulf %107, %106 : vector<8x128xf32>
    %109 = vector.broadcast %11 : vector<1x128xf32> to vector<8x128xf32>
    %110 = arith.mulf %109, %108 : vector<8x128xf32>
    %cst_47 = arith.constant 1.000000e+00 : f32
    %111 = vector.broadcast %cst_47 : f32 to vector<8x128xf32>
    %112 = arith.addf %111, %110 : vector<8x128xf32>
    %113 = arith.mulf %72, %112 : vector<8x128xf32>
    %c0_48 = arith.constant 0 : index
    %c0_49 = arith.constant 0 : index
    %114 = vector.load %arg5[%c0_48, %c0_49] : memref<128x128xf32, #tpu.memory_space<vmem>>, vector<128x128xf32>
    %cst_50 = arith.constant dense<0.000000e+00> : vector<8x128xf32>
    %115 = tpu.matmul %113, %114, %cst_50 {dimension_numbers = #tpu.dot_dimension_numbers<[1], [0], [0], [1], [0, 0, 1, 1], [], []>} : vector<8x128xf32>, vector<128x128xf32>, vector<8x128xf32> -> vector<8x128xf32>
    %116 = vector.broadcast %8 : vector<1x128xf32> to vector<8x128xf32>
    %117 = arith.addf %115, %116 : vector<8x128xf32>
    %118 = arith.addf %117, %72 : vector<8x128xf32>
    %cst_51 = arith.constant dense<0.000000e+00> : vector<8xf32>
    %119 = vector.multi_reduction <add>, %118, %cst_51 [1] : vector<8x128xf32> to vector<8xf32>
    %120 = vector.shape_cast %119 : vector<8xf32> to vector<8x1xf32>
    %cst_52 = arith.constant 1.280000e+02 : f32
    %121 = vector.broadcast %cst_52 : f32 to vector<8x1xf32>
    %122 = arith.divf %120, %121 : vector<8x1xf32>
    %123 = arith.mulf %118, %118 : vector<8x128xf32>
    %cst_53 = arith.constant dense<0.000000e+00> : vector<8xf32>
    %124 = vector.multi_reduction <add>, %123, %cst_53 [1] : vector<8x128xf32> to vector<8xf32>
    %125 = vector.shape_cast %124 : vector<8xf32> to vector<8x1xf32>
    %cst_54 = arith.constant 1.280000e+02 : f32
    %126 = vector.broadcast %cst_54 : f32 to vector<8x1xf32>
    %127 = arith.divf %125, %126 : vector<8x1xf32>
    %128 = arith.mulf %122, %122 : vector<8x1xf32>
    %129 = arith.subf %127, %128 : vector<8x1xf32>
    %cst_55 = arith.constant 0.000000e+00 : f32
    %130 = vector.broadcast %cst_55 : f32 to vector<8x1xf32>
    %131 = arith.maximumf %129, %130 : vector<8x1xf32>
    %132 = vector.broadcast %122 : vector<8x1xf32> to vector<8x128xf32>
    %133 = arith.subf %118, %132 : vector<8x128xf32>
    %cst_56 = arith.constant 9.99999974E-6 : f32
    %134 = vector.broadcast %cst_56 : f32 to vector<8x1xf32>
    %135 = arith.addf %131, %134 : vector<8x1xf32>
    %136 = math.rsqrt %135 : vector<8x1xf32>
    %137 = vector.broadcast %136 : vector<8x1xf32> to vector<8x128xf32>
    %138 = arith.mulf %133, %137 : vector<8x128xf32>
    %139 = vector.broadcast %9 : vector<1x128xf32> to vector<8x128xf32>
    %140 = arith.mulf %138, %139 : vector<8x128xf32>
    %141 = vector.broadcast %10 : vector<1x128xf32> to vector<8x128xf32>
    %142 = arith.addf %140, %141 : vector<8x128xf32>
    %c0_57 = arith.constant 0 : index
    %c0_58 = arith.constant 0 : index
    %143 = vector.load %arg8[%c0_57, %c0_58] : memref<8x128xf32, #tpu.memory_space<vmem>>, vector<8x128xf32>
    tpu.vector_store %arg8[%c0_57, %c0_58], %142 {strides = array<i32>} : memref<8x128xf32, #tpu.memory_space<vmem>>, vector<8x128xf32>,
    return
  }
  func.func @transform_0(%arg0: i32) -> (i32, i32) {
    %c0_i32 = arith.constant 0 : i32
    %c0_i32_0 = arith.constant 0 : i32
    return %arg0, %c0_i32 : i32, i32
  }
  func.func @transform_1(%arg0: i32) -> (i32, i32) {
    %c0_i32 = arith.constant 0 : i32
    %c0_i32_0 = arith.constant 0 : i32
    return %arg0, %c0_i32 : i32, i32
  }
  func.func @transform_2(%arg0: i32) -> (i32, i32) {
    %c0_i32 = arith.constant 0 : i32
    %c0_i32_0 = arith.constant 0 : i32
    %c0_i32_1 = arith.constant 0 : i32
    return %c0_i32, %c0_i32_0 : i32, i32
  }
  func.func @transform_3(%arg0: i32) -> (i32, i32) {
    %c0_i32 = arith.constant 0 : i32
    %c0_i32_0 = arith.constant 0 : i32
    %c0_i32_1 = arith.constant 0 : i32
    return %c0_i32, %c0_i32_0 : i32, i32
  }
  func.func @transform_4(%arg0: i32) -> (i32, i32) {
    %c0_i32 = arith.constant 0 : i32
    %c0_i32_0 = arith.constant 0 : i32
    %c0_i32_1 = arith.constant 0 : i32
    return %c0_i32, %c0_i32_0 : i32, i32
  }
  func.func @transform_5(%arg0: i32) -> (i32, i32) {
    %c0_i32 = arith.constant 0 : i32
    %c0_i32_0 = arith.constant 0 : i32
    %c0_i32_1 = arith.constant 0 : i32
    return %c0_i32, %c0_i32_0 : i32, i32
  }
  func.func @transform_6(%arg0: i32) -> (i32, i32) {
    %c0_i32 = arith.constant 0 : i32
    %c0_i32_0 = arith.constant 0 : i32
    %c0_i32_1 = arith.constant 0 : i32
    return %c0_i32, %c0_i32_0 : i32, i32
  }
  func.func @transform_7(%arg0: i32) -> (i32, i32) {
    %c0_i32 = arith.constant 0 : i32
    %c0_i32_0 = arith.constant 0 : i32
    return %arg0, %c0_i32 : i32, i32
  }
}

</mosaic_0001>

<bundles_post_ra>
// kernel: shap_attention_forward.1
= control target key start
LH: loop header
LB: loop body
LE: loop exit
PB: predicated region body
PF: predicated region fallthrough
CT: control target
= control target key end

     0   :  { %s1705_s0 = inlined_call_operand.hbm [shape: f32[16,256], index: 0, kind: input, shape index: {}]   ;;  %s1706_s1 = inlined_call_operand.hbm [shape: f32[16,256], index: 1, kind: input, shape index: {}]   ;;  %s1707_s2 = inlined_call_operand.hbm [shape: f32[256,128], index: 2, kind: input, shape index: {}]   ;;  %s1708_s3 = inlined_call_operand.hbm [shape: f32[256,128], index: 3, kind: input, shape index: {}]   ;;  %s1709_s4 = inlined_call_operand.hbm [shape: f32[128,128], index: 4, kind: input, shape index: {}]   ;;  %s1710_s5 = inlined_call_operand.hbm [shape: f32[2,256], index: 5, kind: input, shape index: {}]   ;;  %s1711_s6 = inlined_call_operand.hbm [shape: f32[10,128], index: 6, kind: input, shape index: {}]   ;;  %s1712_s7 = inlined_call_operand.hbm [shape: f32[16,128], index: 7, kind: output, shape index: {}]  }
   0x1   :  { %1713 = sst [smem:[#allocation22_spill]] %s1707_s2 }
   0x2   :  { %1714 = sst [smem:[#allocation23_spill]] %s1708_s3 }
   0x3   :  { %1715 = sst [smem:[#allocation24_spill]] %s1709_s4 }
   0x4   :  { %1716 = sst [smem:[#allocation25_spill]] %s1710_s5 }
   0x5   :  { %1717 = sst [smem:[#allocation26_spill]] %s1711_s6 }
   0x6   :  { %12 = vsyncpa [#allocation3], 0 }
   0x7   :  { %14 = vsyncpa [#allocation3 + $0x1], 0 }
   0x8   :  { %15 = vsyncpa [#allocation6], 0 }
   0x9   :  { %17 = vsyncpa [#allocation6 + $0x1], 0 }
   0xa   :  { %18 = vsyncpa [#allocation9], 0 }
   0xb   :  { %19 = vsyncpa [#allocation12], 0 }
   0xc   :  { %20 = vsyncpa [#allocation4], 0 }
   0xd   :  { %22 = vsyncpa [#allocation4 + $0x1], 0  ;;  %s1469_s24 = smov 0   ;;  %s1471_s25 = smov 0  }
   0xe   :  { %s1473_s26 = smov 0   ;;  %s1475_s27 = smov 0  }
   0xf LB: > { %s1718_s2 = sld [smem:[#allocation22_spill]]  ;;  %s1493_s8 = sadd.s32 4294967295, %s1418_s27   ;;  %s1418_s27 = sphi %s1475_s27, %s1736_s27   ;;  %s1414_s26 = sphi %s1473_s26, %s1735_s26   ;;  %s1410_s25 = sphi %s1471_s25, %s1734_s25   ;;  %s1406_s24 = sphi %s1469_s24, %s1733_s24  }
  0x10   : > { %p965_p0 = scmp.ge.s32.totalorder %s1418_s27, 1  ;;  %p49_p1 = scmp.eq.s32.totalorder %s1493_s8, 0 }
  0x11   : > { %p216_p2 = scmp.lt.s32.totalorder %s1418_s27, 3  ;;  %s1420_s10 = smov [#allocation7]  }
  0x12   : > { %s229_s11 = sshll.u32 %s1420_s10, 4  ;;  %s1720_s3 = sld [smem:[#allocation23_spill]]  ;;  %s230_s11 = int_to_ptr.vmem [resolvable:$true] %s229_s11 }
  0x13   : > { %p1498_p3 = pnand %p965_p0, %p216_p2  ;;  %s1722_s5 = sld [smem:[#allocation25_spill]] }
  0x14   : > { %s1421_s19 = smov [#allocation8]   ;;  %s1422_s21 = smov 128  }
  0x15   : > { %s227_s30 = sshll.u32 %s1718_s2, 4  ;;  %p1020_p4 = pneg %p1498_p3  ;;  %s228_s30 = int_to_ptr.hbm [resolvable:$true] %s227_s30 }
  0x16   : > { %s243_s20 = sshll.u32 %s1421_s19, 4  ;;  %s1423_s22 = smov 8   ;;  %s244_s20 = int_to_ptr.vmem [resolvable:$true] %s243_s20 }
  0x17   : > { %p1510_p6 = pnand %p1020_p4, %p49_p1  ;;  %s1723_s4 = sld [smem:[#allocation24_spill]] }
  0x18   : > { %s241_s14 = sshll.u32 %s1720_s3, 4  ;;  %s1424_s10 = smov [#allocation11]   ;;  %s242_s14 = int_to_ptr.hbm [resolvable:$true] %s241_s14 }
  0x19   : > { %s270_s18 = sshll.u32 %s1722_s5, 4  ;;  %s272_s12 = sshll.u32 %s1424_s10, 4  ;;  %s271_s18 = int_to_ptr.hbm [resolvable:$true] %s270_s18  ;;  %s273_s12 = int_to_ptr.vmem [resolvable:$true] %s272_s12 }
  0x1a   : > { %1023 = dma.hbm_to_vmem [thread:$0]  (!%p1510_p6), %s228_s30, 4096, %s230_s11, [#allocation6], %s1422_s21, %s1422_s21, %s1423_s22  }
  0x1b   : > { %1026 = dma.hbm_to_vmem [thread:$0]  (!%p1510_p6), %s242_s14, 4096, %s244_s20, [#allocation9], %s1422_s21, %s1422_s21, %s1423_s22  }
  0x1c   : > { %1032 = dma.hbm_to_vmem [thread:$0]  (!%p1510_p6), %s271_s18, 64, %s273_s12, [#allocation12]  }
  0x1d   : > { %s255_s29 = sshll.u32 %s1723_s4, 4  ;;  %s1425_s30 = smov [#allocation10]   ;;  %s256_s29 = int_to_ptr.hbm [resolvable:$true] %s255_s29 }
  0x1e   : > { %s257_s11 = sshll.u32 %s1425_s30, 4  ;;  %s1724_s6 = sld [smem:[#allocation26_spill]]  ;;  %s258_s11 = int_to_ptr.vmem [resolvable:$true] %s257_s11 }
  0x1f   : > { %1029 = dma.hbm_to_vmem [thread:$0]  (!%p1510_p6), %s256_s29, 2048, %s258_s11, [#allocation9], %s1422_s21, %s1422_s21, %s1423_s22  }
  0x20   : > { %s1426_s17 = smov [#allocation13]   ;;  %s964_s18 = sadd.s32 4294967294, %s1418_s27  }
  0x21   : > { %s283_s19 = sshll.u32 %s1426_s17, 4  ;;  %s1535_s20 = sadd.s32 1, %s1418_s27   ;;  %s284_s19 = int_to_ptr.vmem [resolvable:$true] %s283_s19 }
  0x22   : > { %s35_s23 = sadd.s32 1, %s1414_s26  ;;  %s32_s28 = ssub.s32 %s1418_s27, %s1535_s20 }
  0x23   : > { %p42_p7 = scmp.ne.s32.totalorder %s1414_s26, %s1410_s25  ;;  %p33_p8 = scmp.eq.s32.totalorder %s32_s28, 0 }
  0x24   : > { %s281_s16 = sshll.u32 %s1724_s6, 4  ;;  %p43_p9 = scmp.eq.s32.totalorder %s1418_s27, 0  ;;  %s282_s16 = int_to_ptr.hbm [resolvable:$true] %s281_s16 }
  0x25   : > { %1035 = dma.hbm_to_vmem [thread:$0]  (!%p1510_p6), %s282_s16, 256, %s284_s19, [#allocation12], %s1422_s21, %s1422_s21, %s1423_s22  }
  0x26   : > { %p48_p10 = scmp.ne.s32.totalorder %s1410_s25, %s1406_s24  ;;  %p203_p11 = scmp.eq.s32.totalorder %s1493_s8, 1 }
  0x27   : > { %s1547_s29 = scalar_select %p33_p8, %s1414_s26, %s35_s23  }
  0x28   : > { %p1549_p12 = por %p43_p9, %p42_p7  ;;  %p1555_p13 = por %p49_p1, %p48_p10 }
  0x29   : > { %1725 = sst [smem:[#allocation21_spill]] %s1547_s29  ;;  %p1559_p0 = por %p203_p11, %p42_p7 }
  0x2a   : > { %p209_p2 = scmp.eq.s32.totalorder %s964_s18, 1  ;;  %p1052_p4 = scmp.lt.s32.totalorder %s1418_s27, 2 }
  0x2b   : > { %s297_s22 = sand.u32 1, %s1414_s26   ;;  %s992_s11 = sshll.u32 %s1418_s27, 4 }
  0x2c   : > { %p1565_p6 = por %p209_p2, %p48_p10  ;;  %s972_s30 = sshll.u32 %s297_s22, 4 }
  0x2d   : > { %s306_s16 = scalar_lea.hbm %s1705_s0, %s992_s11  ;;  %s301_s19 = scalar_lea.vmem [#allocation2], %s972_s30 }
  0x2e   : > { %s308_s17 = sshll.u32 %s306_s16, 4  ;;  %s310_s23 = sshll.u32 %s301_s19, 4  ;;  %s309_s17 = int_to_ptr.hbm [resolvable:$true] %s308_s17  ;;  %s311_s23 = int_to_ptr.vmem [resolvable:$true] %s310_s23 }
  0x2f   : > { %p1575_p7 = pnand %p1052_p4, %p1549_p12  ;;  %s326_s3 = scalar_lea.hbm %s1706_s1, %s992_s11 }
  0x30   : > { %s317_s4 = sand.u32 1, %s1418_s27   ;;  %s298_s5 = scalar_lea.sflag [#allocation3], %s297_s22 }
  0x31   : > { %s1276_s13 = sshra.s32 %s309_s17, 4  ;;  %p1280_p9 = pneg %p1575_p7  ;;  %s1277_s13 = int_to_ptr.hbm [resolvable:$true] %s1276_s13 }
  0x32   : > { %s1278_s14 = scalar_lea.hbm %s1277_s13, 16  ;;  %s1283_s19 = scalar_lea.hbm %s1705_s0, 32 }
  0x33   : > { %p1279_p8 = scmp.ne.s32.totalorder %s1277_s13, %s1278_s14  ;;  %p1284_p12 = scmp.lt.s32.totalorder %s1277_s13, %s1705_s0 }
  0x34   : > { %p1285_p2 = scmp.lt.s32.totalorder %s1283_s19, %s1278_s14 }
  0x35   : > { %p1281_p10 = pnand %p1280_p9, %p1279_p8 }
  0x36   : > { %p1286_p4 = por %p1285_p2, %p1284_p12 }
  0x37   : > { %p1282_p11 = pneg %p1281_p10 }
  0x39   : > { %p1287_p5 = pnand %p1286_p4, %p1282_p11 }
  0x3b   : > { %1290 = shalt.err (!%p1287_p5)
}
  0x3c   : > { %1039 = dma.hbm_to_vmem [thread:$0]  (!%p1575_p7), %s309_s17, 256, %s311_s23, %s298_s5  }
  0x3d   : > { %s328_s22 = sshll.u32 %s326_s3, 4  ;;  %s321_s11 = scalar_lea.vmem [#allocation5], %s972_s30  ;;  %s329_s22 = int_to_ptr.hbm [resolvable:$true] %s328_s22 }
  0x3e   : > { %s330_s6 = sshll.u32 %s321_s11, 4  ;;  %s318_s29 = scalar_lea.sflag [#allocation6], %s317_s4  ;;  %s331_s6 = int_to_ptr.vmem [resolvable:$true] %s330_s6 }
  0x3f   : > { %s1306_s10 = sshra.s32 %s329_s22, 4  ;;  %s1313_s19 = scalar_lea.hbm %s1706_s1, 32  ;;  %s1307_s10 = int_to_ptr.hbm [resolvable:$true] %s1306_s10 }
  0x40   : > { %s1308_s16 = scalar_lea.hbm %s1307_s10, 16  ;;  %p1314_p5 = scmp.lt.s32.totalorder %s1307_s10, %s1706_s1 }
  0x41   : > { %p1309_p8 = scmp.ne.s32.totalorder %s1307_s10, %s1308_s16  ;;  %p1315_p11 = scmp.lt.s32.totalorder %s1313_s19, %s1308_s16 }
  0x43   : > { %p1311_p10 = pnand %p1309_p8, %p1280_p9  ;;  %p1316_p2 = por %p1315_p11, %p1314_p5 }
  0x45   : > { %p1312_p12 = pneg %p1311_p10 }
  0x47   : > { %p1317_p4 = pnand %p1316_p2, %p1312_p12 }
  0x49   : > { %1320 = shalt.err (!%p1317_p4)
}
  0x4a   : > { %1042 = dma.hbm_to_vmem [thread:$0]  (!%p1575_p7), %s329_s22, 256, %s331_s6, %s318_s29  }
  0x4b   : > { %339 = sbr.rel (%p1498_p3) target bundleno = 871 (0x367), region = 48  ;;  %s1610_s3 = sand.u32 (!%p1498_p3), 1, %s1410_s25  }
  0x4c   : > { %s979_s4 = sshll.u32 (!%p1498_p3), %s1610_s3, 4  ;;  %s342_s30 = scalar_lea.sflag (!%p1498_p3), [#allocation3], %s1610_s3 }
  0x4d   : > { %s345_s17 = scalar_lea.vmem (!%p1498_p3), [#allocation2], %s979_s4 }
  0x50   : > { %1381 = dma.done.wait (%p1555_p13), %s342_s30, 256  }
  0x51   : > { %1383 = vsyncadd (%p1555_p13), %s342_s30, 4294967040  ;;  %s351_s6 = sand.u32 1, %s1493_s8   ;;  %s1619_s9 = scalar_lea.vmem [#allocation5], %s979_s4 }
  0x52   : > { %s352_s29 = scalar_lea.sflag [#allocation6], %s351_s6 }
  0x53   : > { %1385 = dma.done.wait (%p1555_p13), %s352_s29, 256  }
  0x54   : > { %1387 = vsyncadd (%p1555_p13), %s352_s29, 4294967040 }
  0x55   : > { %1389 = dma.done.wait (%p49_p1), [#allocation6], 4096  }
  0x56   : > { %1391 = vsyncadd (%p49_p1), [#allocation6], 4294963200 }
  0x57   : > { %1393 = dma.done.wait (%p49_p1), [#allocation9], 6144  }
  0x58   : > { %1395 = vsyncadd (%p49_p1), [#allocation9], 4294961152 }
  0x59   : > { %1397 = dma.done.wait (%p49_p1), [#allocation12], 320  }
  0x5a   : > { %1399 = vsyncadd (%p49_p1), [#allocation12], 4294966976  ;;  %v1637_v0 = vld [vmem:[%s345_s17] sm:$0xff]  ;;  %v1639_v1 = vld [vmem:[%s345_s17 + $0x8] sm:$0xff]  ;;  %v1427_v40 = vmov 256.0   ;;  %s986_s15 = sshll.u32 %s1610_s3, 3 }
  0x5b   : > { %v649_v2 = vld [vmem:[#allocation8 + $0x78] sm:$0xff]  ;;  %v432_v3 = vadd.f32 %v1639_v1, %v1637_v0  ;;  %v648_v4 = vld [vmem:[#allocation8 + $0x70] sm:$0xff]  ;;  %v647_v6 = vld [vmem:[#allocation8 + $0x68] sm:$0xff]  ;;  %v443_v8 = vmul.f32 %v1637_v0, %v1637_v0  ;;  %v444_v9 = vmul.f32 %v1639_v1, %v1639_v1  ;;  %1110 = vrcp.f32 %v1427_v40  ;;  %s989_s23 = sshll.u32 %s1493_s8, 3  ;;  %s416_s11 = scalar_lea.vmem [#allocation14], %s986_s15 }
  0x5c   : > { %667 = vmatpush.msra.mxu2 %v649_v2  ;;  %v665_v5 = vld [vmem:[#allocation8 + $0xf8] sm:$0xff]  ;;  %v664_v7 = vld [vmem:[#allocation8 + $0xf0] sm:$0xff]  ;;  %v663_v10 = vld [vmem:[#allocation8 + $0xe8] sm:$0xff]  ;;  %s819_s22 = scalar_lea.hbm %s1712_s7, %s989_s23  ;;  %s821_s10 = sshll.u32 %s416_s11, 4  ;;  %s822_s10 = int_to_ptr.vmem [resolvable:$true] %s821_s10 }
  0x5d   : > { %687 = vmatpush.msra.mxu3 %v665_v5  ;;  %433 = vadd.xlane.f32.xlu0 %v432_v3  ;;  %v646_v11 = vld [vmem:[#allocation8 + $0x60] sm:$0xff]  ;;  %v645_v13 = vld [vmem:[#allocation8 + $0x58] sm:$0xff]  ;;  %v445_v14 = vadd.f32 %v444_v9, %v443_v8  ;;  %v644_v16 = vld [vmem:[#allocation8 + $0x50] sm:$0xff]  ;;  %s823_s16 = sshll.u32 %s819_s22, 4  ;;  %s809_s8 = scalar_lea.sflag [#allocation4], %s1610_s3  ;;  %s824_s16 = int_to_ptr.hbm [resolvable:$true] %s823_s16 }
  0x5e   : > { %668 = vmatpush.msra.mxu2 %v648_v4  ;;  %v662_v12 = vld [vmem:[#allocation8 + $0xe0] sm:$0xff]  ;;  %v661_v15 = vld [vmem:[#allocation8 + $0xd8] sm:$0xff]  ;;  %v660_v17 = vld [vmem:[#allocation8 + $0xd0] sm:$0xff]  ;;  %s1350_s13 = sshra.s32 %s824_s16, 4  ;;  %s1356_s5 = scalar_lea.hbm %s1712_s7, 16  ;;  %s1351_s13 = int_to_ptr.hbm [resolvable:$true] %s1350_s13 }
  0x5f   : > { %688 = vmatpush.msra.mxu3 %v664_v7  ;;  %v643_v18 = vld [vmem:[#allocation8 + $0x48] sm:$0xff]  ;;  %v642_v19 = vld [vmem:[#allocation8 + $0x40] sm:$0xff]  ;;  %v641_v22 = vld [vmem:[#allocation8 + $0x38] sm:$0xff]  ;;  %s1352_s14 = scalar_lea.hbm %s1351_s13, 8  ;;  %p1357_p7 = scmp.lt.s32.totalorder %s1351_s13, %s1712_s7 }
  0x60   : > { %669 = vmatpush.msra.mxu2 %v647_v6  ;;  %v659_v20 = vld [vmem:[#allocation8 + $0xc8] sm:$0xff]  ;;  %v658_v21 = vld [vmem:[#allocation8 + $0xc0] sm:$0xff]  ;;  %v657_v23 = vld [vmem:[#allocation8 + $0xb8] sm:$0xff]  ;;  %p1353_p1 = scmp.ne.s32.totalorder %s1351_s13, %s1352_s14  ;;  %p1358_p9 = scmp.lt.s32.totalorder %s1356_s5, %s1352_s14 }
  0x61   : > { %689 = vmatpush.msra.mxu3 %v663_v10  ;;  %v640_v24 = vld [vmem:[#allocation8 + $0x30] sm:$0xff]  ;;  %v639_v26 = vld [vmem:[#allocation8 + $0x28] sm:$0xff]  ;;  %v638_v28 = vld [vmem:[#allocation8 + $0x20] sm:$0xff]  ;;  %v1111_v47 = vpop.eup %1110 }
  0x62   : > { %670 = vmatpush.msra.mxu2 %v646_v11  ;;  %v656_v25 = vld [vmem:[#allocation8 + $0xb0] sm:$0xff]  ;;  %v655_v27 = vld [vmem:[#allocation8 + $0xa8] sm:$0xff]  ;;  %v654_v29 = vld [vmem:[#allocation8 + $0xa0] sm:$0xff]  ;;  %v436_v52 = vmul.f32 256.0, %v1111_v47  ;;  %vm440_vm0 = vweird.f32 %v1111_v47  ;;  %p1354_p3 = pnand %p1353_p1, %p1559_p0  ;;  %p1359_p8 = por %p1358_p9, %p1357_p7 }
  0x63   : > { %690 = vmatpush.msra.mxu3 %v662_v12  ;;  %v637_v30 = vld [vmem:[#allocation8 + $0x18] sm:$0xff]  ;;  %v636_v32 = vld [vmem:[#allocation8 + $0x10] sm:$0xff]  ;;  %v635_v34 = vld [vmem:[#allocation8 + $0x8] sm:$0xff] }
  0x64   : > { %671 = vmatpush.msra.mxu2 %v645_v13  ;;  %v653_v31 = vld [vmem:[#allocation8 + $0x98] sm:$0xff]  ;;  %v652_v33 = vld [vmem:[#allocation8 + $0x90] sm:$0xff]  ;;  %v651_v35 = vld [vmem:[#allocation8 + $0x88] sm:$0xff]  ;;  %v437_v57 = vsub.f32 1.0, %v436_v52  ;;  %p1355_p13 = pneg %p1354_p3 }
  0x65   : > { %691 = vmatpush.msra.mxu3 %v661_v15  ;;  %446 = vadd.xlane.f32.xlu0 %v445_v14  ;;  %v634_v36 = vld [vmem:[#allocation8] sm:$0xff]  ;;  %v633_v39 = vld [vmem:[%s1619_s9 + $0x8] sm:$0xff]  ;;  %v495_v43 = vld [vmem:[#allocation7 + $0x70] sm:$0xff] }
  0x66   : > { %672 = vmatpush.msra.mxu2 %v644_v16  ;;  %v632_v37 = vld [vmem:[%s1619_s9] sm:$0xff]  ;;  %v496_v41 = vld [vmem:[#allocation7 + $0x78] sm:$0xff]  ;;  %v494_v45 = vld [vmem:[#allocation7 + $0x68] sm:$0xff]  ;;  %v438_v62 = vmul.f32 %v1111_v47, %v437_v57  ;;  %p1360_p10 = pnand %p1359_p8, %p1355_p13 }
  0x67   : > { %692 = vmatpush.msra.mxu3 %v660_v17  ;;  %v650_v38 = vld [vmem:[#allocation8 + $0x80] sm:$0xff]  ;;  %v512_v42 = vld [vmem:[#allocation7 + $0xf8] sm:$0xff]  ;;  %514 = vmatpush.msra.mxu0 %v496_v41  ;;  %v511_v44 = vld [vmem:[#allocation7 + $0xf0] sm:$0xff] }
  0x68   : > { %673 = vmatpush.msra.mxu2 %v643_v18  ;;  %534 = vmatpush.msra.mxu1 %v512_v42  ;;  %v510_v46 = vld [vmem:[#allocation7 + $0xe8] sm:$0xff]  ;;  %v493_v48 = vld [vmem:[#allocation7 + $0x60] sm:$0xff]  ;;  %v492_v50 = vld [vmem:[#allocation7 + $0x58] sm:$0xff]  ;;  %v439_v5 = vadd.f32 %v1111_v47, %v438_v62 }
  0x69   : > { %693 = vmatpush.msra.mxu3 %v659_v20  ;;  %515 = vmatpush.msra.mxu0 %v495_v43  ;;  %v509_v49 = vld [vmem:[#allocation7 + $0xe0] sm:$0xff]  ;;  %v508_v51 = vld [vmem:[#allocation7 + $0xd8] sm:$0xff]  ;;  %v491_v53 = vld [vmem:[#allocation7 + $0x50] sm:$0xff] }
  0x6a   : > { %674 = vmatpush.msra.mxu2 %v642_v19  ;;  %535 = vmatpush.msra.mxu1 %v511_v44  ;;  %v507_v54 = vld [vmem:[#allocation7 + $0xd0] sm:$0xff]  ;;  %v490_v55 = vld [vmem:[#allocation7 + $0x48] sm:$0xff]  ;;  %v489_v58 = vld [vmem:[#allocation7 + $0x40] sm:$0xff]  ;;  %v441_v13 = vsel %vm440_vm0, %v1111_v47, %v439_v5 }
  0x6b   : > { %694 = vmatpush.msra.mxu3 %v658_v21  ;;  %516 = vmatpush.msra.mxu0 %v494_v45  ;;  %v506_v56 = vld [vmem:[#allocation7 + $0xc8] sm:$0xff]  ;;  %v505_v59 = vld [vmem:[#allocation7 + $0xc0] sm:$0xff]  ;;  %v488_v60 = vld [vmem:[#allocation7 + $0x38] sm:$0xff] }
  0x6c   : > { %675 = vmatpush.msra.mxu2 %v641_v22  ;;  %536 = vmatpush.msra.mxu1 %v510_v46  ;;  %v504_v61 = vld [vmem:[#allocation7 + $0xb8] sm:$0xff]  ;;  %v487_v63 = vld [vmem:[#allocation7 + $0x30] sm:$0xff]  ;;  %v486_v3 = vld [vmem:[#allocation7 + $0x28] sm:$0xff] }
  0x6d   : > { %695 = vmatpush.msra.mxu3 %v657_v23  ;;  %517 = vmatpush.msra.mxu0 %v493_v48  ;;  %v503_v2 = vld [vmem:[#allocation7 + $0xb0] sm:$0xff]  ;;  %v502_v4 = vld [vmem:[#allocation7 + $0xa8] sm:$0xff]  ;;  %v485_v6 = vld [vmem:[#allocation7 + $0x20] sm:$0xff] }
  0x6e   : > { %676 = vmatpush.msra.mxu2 %v640_v24  ;;  %537 = vmatpush.msra.mxu1 %v509_v49  ;;  %v501_v7 = vld [vmem:[#allocation7 + $0xa0] sm:$0xff]  ;;  %v484_v8 = vld [vmem:[#allocation7 + $0x18] sm:$0xff]  ;;  %v483_v11 = vld [vmem:[#allocation7 + $0x10] sm:$0xff] }
  0x6f   : > { %696 = vmatpush.msra.mxu3 %v656_v25  ;;  %518 = vmatpush.msra.mxu0 %v492_v50  ;;  %v500_v9 = vld [vmem:[#allocation7 + $0x98] sm:$0xff]  ;;  %v499_v12 = vld [vmem:[#allocation7 + $0x90] sm:$0xff]  ;;  %v482_v14 = vld [vmem:[#allocation7 + $0x8] sm:$0xff] }
  0x70   : > { %677 = vmatpush.msra.mxu2 %v639_v26  ;;  %538 = vmatpush.msra.mxu1 %v508_v51  ;;  %v498_v15 = vld [vmem:[#allocation7 + $0x88] sm:$0xff]  ;;  %v481_v17 = vld [vmem:[#allocation7] sm:$0xff] }
  0x71   : > { %697 = vmatpush.msra.mxu3 %v655_v27  ;;  %519 = vmatpush.msra.mxu0 %v491_v53  ;;  %v497_v18 = vld [vmem:[#allocation7 + $0x80] sm:$0xff] }
  0x72   : > { %678 = vmatpush.msra.mxu2 %v638_v28  ;;  %539 = vmatpush.msra.mxu1 %v507_v54  ;;  %v1100_v46 = vld [vmem:[#allocation13 + $0x3] ss:$0 sm:$0xff]  ;;  %v1101_v50 = vld [vmem:[#allocation13] ss:$0 sm:$0xff] }
  0x73   : > { %698 = vmatpush.msra.mxu3 %v654_v29  ;;  %520 = vmatpush.msra.mxu0 %v490_v55 }
  0x74   : > { %679 = vmatpush.msra.mxu2 %v637_v30  ;;  %540 = vmatpush.msra.mxu1 %v506_v56  ;;  %v417_v30 = vld [vmem:[#allocation11] ss:$2 sm:$0x3] }
  0x75   : > { %699 = vmatpush.msra.mxu3 %v653_v31  ;;  %521 = vmatpush.msra.mxu0 %v489_v58  ;;  %v419_v31 = vld [vmem:[#allocation11 + $0x1] ss:$2 sm:$0x3] }
  0x76   : > { %680 = vmatpush.msra.mxu2 %v636_v32  ;;  %541 = vmatpush.msra.mxu1 %v505_v59  ;;  %v476_v41 = vperm.slane %v419_v31, 1 }
  0x77   : > { %700 = vmatpush.msra.mxu3 %v652_v33  ;;  %522 = vmatpush.msra.mxu0 %v488_v60 }
  0x78   : > { %681 = vmatpush.msra.mxu2 %v635_v34  ;;  %542 = vmatpush.msra.mxu1 %v504_v61 }
  0x79   : > { %701 = vmatpush.msra.mxu3 %v651_v35  ;;  %523 = vmatpush.msra.mxu0 %v487_v63  ;;  %v468_v35 = vperm.slane %v417_v30, 0 }
  0x7a   : > { %682 = vmatpush.msra.mxu2 %v634_v36  ;;  %543 = vmatpush.msra.mxu1 %v503_v2  ;;  %v469_v36 = vperm.slane %v417_v30, 1 }
  0x7b   : > { %683 = vmatmul.f32.vlgmr.msra.gmra.mxu2 %v632_v37  ;;  %702 = vmatpush.msra.mxu3 %v650_v38 }
  0x7c   : > { %703 = vmatmul.f32.vlgmr.msra.gmra.mxu3 %v633_v39  ;;  %524 = vmatpush.msra.mxu0 %v486_v3  ;;  %v475_v39 = vperm.slane %v419_v31, 0 }
  0x7d   : > { %544 = vmatpush.msra.mxu1 %v502_v4 }
  0x7e   : > { %525 = vmatpush.msra.mxu0 %v485_v6 }
  0x7f   : > { %545 = vmatpush.msra.mxu1 %v501_v7 }
  0x80   : > { %526 = vmatpush.msra.mxu0 %v484_v8 }
  0x81   : > { %546 = vmatpush.msra.mxu1 %v500_v9 }
  0x82   : > { %527 = vmatpush.msra.mxu0 %v483_v11 }
  0x83   : > { %547 = vmatpush.msra.mxu1 %v499_v12 }
  0x84   : > { %528 = vmatpush.msra.mxu0 %v482_v14 }
  0x85   : > { %548 = vmatpush.msra.mxu1 %v498_v15 }
  0x86   : > { %529 = vmatpush.msra.mxu0 %v481_v17 }
  0x87   : > { %549 = vmatpush.msra.mxu1 %v497_v18 }
  0xd0   : > { %v434_v10 = vpop.xlane.xlu0 %433 }
  0xd1   : > { %v442_v16 = vmul.f32 %v441_v13, %v434_v10 }
  0xd3   : > { %v449_v20 = vmul.f32 %v442_v16, %v442_v16  ;;  %v452_v33 = vsub.f32 %v1637_v0, %v442_v16  ;;  %v453_v34 = vsub.f32 %v1639_v1, %v442_v16 }
  0xd8   : > { %v447_v19 = vpop.xlane.xlu0 %446 }
  0xd9   : > { %v448_v21 = vmul.f32 %v447_v19, %v441_v13 }
  0xdb   : > { %v450_v22 = vsub.f32 %v448_v21, %v449_v20 }
  0xdd   : > { %v451_v23 = vmax.f32 %v450_v22, 0.0 }
  0xdf   : > { %v454_v24 = vadd.f32 1e-05, %v451_v23 }
  0xe1   : > { %1112 = vrsqrt.f32 %v454_v24  ;;  %vm461_vm2 = vweird.f32 %v454_v24 }
  0xe7   : > { %v1113_v25 = vpop.eup %1112 }
  0xe8   : > { %v456_v26 = vmul.f32 %v1113_v25, %v454_v24  ;;  %vm462_vm1 = vweird.f32 %v1113_v25 }
  0xe9   : > { %vm463_vm3 = vmor %vm461_vm2, %vm462_vm1 }
  0xea   : > { %v457_v27 = vmul.f32 %v1113_v25, %v456_v26 }
  0xec   : > { %v458_v28 = vmul.f32 0.5, %v457_v27 }
  0xee   : > { %v459_v29 = vsub.f32 1.5, %v458_v28 }
  0xf0   : > { %v460_v32 = vmul.f32 %v1113_v25, %v459_v29 }
  0xf2   : > { %v464_v37 = vsel %vm463_vm3, %v1113_v25, %v460_v32 }
  0xf3   : > { %v465_v38 = vmul.f32 %v464_v37, %v452_v33  ;;  %v466_v40 = vmul.f32 %v464_v37, %v453_v34  ;;  %v1428_v33 = vmov 128.0  }
  0xf5   : > { %v472_v42 = vmul.f32 %v468_v35, %v465_v38  ;;  %v473_v43 = vmul.f32 %v469_v36, %v466_v40 }
  0xf7   : > { %v479_v44 = vadd.f32 %v475_v39, %v472_v42  ;;  %v480_v45 = vadd.f32 %v476_v41, %v473_v43 }
  0xf9   : > { %530 = vmatmul.f32.vlgmr.msra.gmra.mxu0 %v479_v44  ;;  %550 = vmatmul.f32.vlgmr.msra.gmra.mxu1 %v480_v45 }
  0xfe   : > { %v684_v47 = vpop.f32.mrf.mxu2 }
  0xff   : > { %v685_v48 = vadd.f32 %v1100_v46, %v684_v47  ;;  %v704_v0 = vpop.f32.mrf.mxu3 }
 0x101   : > { %v1651_v49 = vadd.f32 %v704_v0, %v685_v48 }
 0x103   : > { %707 = vadd.xlane.f32.xlu1 %v1651_v49  ;;  %v710_v1 = vmul.f32 %v1651_v49, %v1651_v49 }
 0x10b   : > { %711 = vadd.xlane.f32.xlu1 %v710_v1  ;;  %v757_v1 = vld [vmem:[#allocation10 + $0x78] sm:$0xff] }
 0x10c   : > { %759 = vmatpush.msrb.mxu0 %v757_v1 }
 0x176   : > { %v531_v51 = vpop.f32.mrf.mxu0  ;;  %v551_v53 = vpop.f32.mrf.mxu1 }
 0x177   : > { %v532_v52 = vadd.f32 %v1101_v50, %v531_v51  ;;  %v708_v38 = vpop.xlane.xlu1 %707  ;;  %v756_v50 = vld [vmem:[#allocation10 + $0x70] sm:$0xff] }
 0x178   : > { %760 = vmatpush.msrb.mxu0 %v756_v50 }
 0x179   : > { %v552_v54 = vadd.f32 %v551_v53, %v532_v52  ;;  %v755_v52 = vld [vmem:[#allocation10 + $0x68] sm:$0xff]  ;;  %v754_v53 = vld [vmem:[#allocation10 + $0x60] sm:$0xff] }
 0x17a   : > { %761 = vmatpush.msrb.mxu0 %v755_v52 }
 0x17b   : > { %v555_v55 = vmul.f32 0.70710677, %v552_v54  ;;  %v554_v29 = vmul.f32 0.5, %v552_v54 }
 0x17c   : > { %762 = vmatpush.msrb.mxu0 %v754_v53 }
 0x17d   : > { %v556_v56 = vmul.f32 %v555_v55, %v555_v55 }
 0x17f   : > { %v557_v57 = vmin.f32 %v556_v56, 16.0  ;;  %v712_v42 = vpop.xlane.xlu1 %711  ;;  %v752_v56 = vld [vmem:[#allocation10 + $0x50] sm:$0xff] }
 0x181   : > { %v558_v58 = vmul.f32 2.1237322e-06, %v557_v57  ;;  %v569_v59 = vmul.f32 3.8918573e-05, %v557_v57 }
 0x183   : > { %v559_v60 = vadd.f32 0.00028619796, %v558_v58  ;;  %v570_v61 = vadd.f32 0.001143296, %v569_v59  ;;  %v751_v58 = vld [vmem:[#allocation10 + $0x48] sm:$0xff]  ;;  %v750_v59 = vld [vmem:[#allocation10 + $0x40] sm:$0xff] }
 0x185   : > { %v560_v62 = vmul.f32 %v559_v60, %v557_v57  ;;  %v571_v63 = vmul.f32 %v570_v61, %v557_v57  ;;  %v749_v61 = vld [vmem:[#allocation10 + $0x38] sm:$0xff] }
 0x187   : > { %v572_v2 = vadd.f32 0.014752088, %v571_v63  ;;  %v561_v3 = vadd.f32 0.0036580483, %v560_v62  ;;  %v748_v63 = vld [vmem:[#allocation10 + $0x30] sm:$0xff] }
 0x189   : > { %v573_v4 = vmul.f32 %v572_v2, %v557_v57  ;;  %v562_v6 = vmul.f32 %v561_v3, %v557_v57 }
 0x18b   : > { %v574_v5 = vadd.f32 0.112945676, %v573_v4  ;;  %v563_v9 = vadd.f32 0.05243302, %v562_v6  ;;  %v747_v4 = vld [vmem:[#allocation10 + $0x28] sm:$0xff] }
 0x18d   : > { %v575_v7 = vmul.f32 %v574_v5, %v557_v57  ;;  %v564_v12 = vmul.f32 %v563_v9, %v557_v57  ;;  %v746_v5 = vld [vmem:[#allocation10 + $0x20] sm:$0xff]  ;;  %v744_v9 = vld [vmem:[#allocation10 + $0x10] sm:$0xff] }
 0x18f   : > { %v576_v8 = vadd.f32 0.4994258, %v575_v7  ;;  %v565_v13 = vadd.f32 0.18741608, %v564_v12  ;;  %v745_v7 = vld [vmem:[#allocation10 + $0x18] sm:$0xff] }
 0x191   : > { %v577_v10 = vmul.f32 %v576_v8, %v557_v57  ;;  %v566_v15 = vmul.f32 %v565_v13, %v557_v57  ;;  %v1104_v8 = vld [vmem:[#allocation13 + $0x4] ss:$0 sm:$0xff]  ;;  %v1105_v13 = vld [vmem:[#allocation13 + $0x5] ss:$0 sm:$0xff] }
 0x193   : > { %v578_v11 = vadd.f32 1.0, %v577_v10  ;;  %v567_v19 = vadd.f32 1.1283791, %v566_v15 }
 0x195   : > { %1114 = vrcp.f32 %v578_v11  ;;  %v590_v18 = vand.u32 2147483648, %v578_v11  ;;  %v588_v21 = vand.u32 2147483647, %v578_v11  ;;  %vm584_vm5 = vweird.f32 %v578_v11 }
 0x196   : > { %v568_v24 = vmul.f32 %v567_v19, %v555_v55  ;;  %1116 = vrcp.f32 %v1428_v33  ;;  %v753_v55 = vld [vmem:[#allocation10 + $0x58] sm:$0xff] }
 0x197   : > { %v591_v23 = vor.u32 1.1754944e-38, %v590_v18  ;;  %vm589_vm7 = vcmp.eq.f32.partialorder %v588_v21, 8.507059e+37  ;;  %763 = vmatpush.msrb.mxu0 %v753_v55 }
 0x199   : > { %764 = vmatpush.msrb.mxu0 %v752_v56 }
 0x19b   : > { %v1115_v14 = vpop.eup %1114  ;;  %765 = vmatpush.msrb.mxu0 %v751_v58 }
 0x19c   : > { %v580_v16 = vmul.f32 %v1115_v14, %v578_v11  ;;  %vm585_vm4 = vweird.f32 %v1115_v14  ;;  %v1117_v34 = vpop.eup %1116  ;;  %v743_v11 = vld [vmem:[#allocation10 + $0x8] sm:$0xff] }
 0x19d   : > { %vm586_vm6 = vmor %vm584_vm5, %vm585_vm4  ;;  %v601_v35 = vmul.f32 128.0, %v1117_v34  ;;  %vm605_vm8 = vweird.f32 %v1117_v34  ;;  %766 = vmatpush.msrb.mxu0 %v750_v59 }
 0x19e   : > { %v581_v17 = vsub.f32 1.0, %v580_v16 }
 0x19f   : > { %v602_v36 = vsub.f32 1.0, %v601_v35  ;;  %767 = vmatpush.msrb.mxu0 %v749_v61 }
 0x1a0   : > { %v582_v20 = vmul.f32 %v1115_v14, %v581_v17 }
 0x1a1   : > { %v603_v37 = vmul.f32 %v1117_v34, %v602_v36  ;;  %768 = vmatpush.msrb.mxu0 %v748_v63 }
 0x1a2   : > { %v583_v22 = vadd.f32 %v1115_v14, %v582_v20 }
 0x1a3   : > { %v604_v39 = vadd.f32 %v1117_v34, %v603_v37  ;;  %769 = vmatpush.msrb.mxu0 %v747_v4  ;;  %v1103_v37 = vld [vmem:[#allocation13 + $0x2] ss:$0 sm:$0xff] }
 0x1a4   : > { %v587_v25 = vsel %vm586_vm6, %v1115_v14, %v583_v22  ;;  %v742_v14 = vld [vmem:[#allocation10] sm:$0xff] }
 0x1a5   : > { %v592_v26 = vsel %vm589_vm7, %v591_v23, %v587_v25  ;;  %v1661_v40 = vsel %vm605_vm8, %v1117_v34, %v604_v39  ;;  %770 = vmatpush.msrb.mxu0 %v746_v5  ;;  %v1102_v34 = vld [vmem:[#allocation13 + $0x1] ss:$0 sm:$0xff] }
 0x1a6   : > { %v593_v27 = vmul.f32 %v592_v26, %v568_v24  ;;  %v709_v41 = vmul.f32 %v708_v38, %v1661_v40  ;;  %v713_v44 = vmul.f32 %v712_v42, %v1661_v40 }
 0x1a7   : > { %771 = vmatpush.msrb.mxu0 %v745_v7 }
 0x1a8   : > { %v987_v28 = vclamps-f32 %v593_v27, 1.0  ;;  %v714_v43 = vmul.f32 %v709_v41, %v709_v41  ;;  %v717_v62 = vsub.f32 %v1651_v49, %v709_v41 }
 0x1a9   : > { %772 = vmatpush.msrb.mxu0 %v744_v9 }
 0x1aa   : > { %v596_v30 = vadd.f32 1.0, %v987_v28  ;;  %v715_v45 = vsub.f32 %v713_v44, %v714_v43  ;;  %v1107_v44 = vld [vmem:[#allocation13 + $0x6] ss:$0 sm:$0xff] }
 0x1ab   : > { %773 = vmatpush.msrb.mxu0 %v743_v11 }
 0x1ac   : > { %v1656_v31 = vmul.f32 %v596_v30, %v554_v29  ;;  %v716_v46 = vmax.f32 %v715_v45, 0.0  ;;  %v1106_v30 = vld [vmem:[#allocation13 + $0x9] ss:$0 sm:$0xff] }
 0x1ad   : > { %774 = vmatpush.msrb.mxu0 %v742_v14 }
 0x1ae   : > { %598 = vadd.xlane.f32.xlu2 %v1656_v31  ;;  %v608_v32 = vmul.f32 %v1656_v31, %v1656_v31  ;;  %v718_v47 = vadd.f32 1e-05, %v716_v46 }
 0x1b0   : > { %1118 = vrsqrt.f32 %v718_v47  ;;  %vm725_vm9 = vweird.f32 %v718_v47 }
 0x1b6   : > { %609 = vadd.xlane.f32.xlu2 %v608_v32  ;;  %v1119_v48 = vpop.eup %1118 }
 0x1b7   : > { %v720_v0 = vmul.f32 %v1119_v48, %v718_v47  ;;  %vm726_vm10 = vweird.f32 %v1119_v48 }
 0x1b8   : > { %vm727_vm11 = vmor %vm725_vm9, %vm726_vm10 }
 0x1b9   : > { %v721_v51 = vmul.f32 %v1119_v48, %v720_v0 }
 0x1bb   : > { %v722_v54 = vmul.f32 0.5, %v721_v51 }
 0x1bd   : > { %v723_v57 = vsub.f32 1.5, %v722_v54 }
 0x1bf   : > { %v724_v60 = vmul.f32 %v1119_v48, %v723_v57 }
 0x1c1   : > { %v728_v2 = vsel %vm727_vm11, %v1119_v48, %v724_v60 }
 0x1c2   : > { %v729_v6 = vmul.f32 %v728_v2, %v717_v62  ;;  %v1108_v62 = vld [vmem:[#allocation13 + $0x7] ss:$0 sm:$0xff]  ;;  %v1109_v2 = vld [vmem:[#allocation13 + $0x8] ss:$0 sm:$0xff] }
 0x1c4   : > { %v731_v12 = vmul.f32 %v1104_v8, %v729_v6 }
 0x1c6   : > { %v733_v17 = vadd.f32 %v1105_v13, %v731_v12 }
 0x1c8   : > { %v734_v20 = vmul.f32 0.5, %v733_v17 }
 0x221   : > { %v599_v3 = vpop.xlane.xlu2 %598 }
 0x222   : > { %v607_v10 = vmul.f32 %v1661_v40, %v599_v3 }
 0x224   : > { %v612_v15 = vmul.f32 %v607_v10, %v607_v10  ;;  %v615_v33 = vsub.f32 %v1656_v31, %v607_v10 }
 0x229   : > { %v610_v49 = vpop.xlane.xlu2 %609 }
 0x22a   : > { %v611_v16 = vmul.f32 %v610_v49, %v1661_v40 }
 0x22c   : > { %v613_v18 = vsub.f32 %v611_v16, %v612_v15 }
 0x22e   : > { %v614_v19 = vmax.f32 %v613_v18, 0.0 }
 0x230   : > { %v616_v21 = vadd.f32 1e-05, %v614_v19 }
 0x232   : > { %1120 = vrsqrt.f32 %v616_v21  ;;  %vm623_vm13 = vweird.f32 %v616_v21 }
 0x233   : > { %1122 = vtanh.f32 %v734_v20 }
 0x238   : > { %v1121_v22 = vpop.eup %1120 }
 0x239   : > { %v1123_v23 = vpop.eup %1122  ;;  %v618_v24 = vmul.f32 %v1121_v22, %v616_v21  ;;  %vm624_vm12 = vweird.f32 %v1121_v22 }
 0x23a   : > { %v736_v26 = vadd.f32 1.0, %v1123_v23  ;;  %vm625_vm14 = vmor %vm623_vm13, %vm624_vm12 }
 0x23b   : > { %v619_v25 = vmul.f32 %v1121_v22, %v618_v24 }
 0x23c   : > { %v737_v29 = vmul.f32 0.5, %v736_v26 }
 0x23d   : > { %v620_v27 = vmul.f32 0.5, %v619_v25 }
 0x23e   : > { %v739_v38 = vmul.f32 %v1106_v30, %v737_v29 }
 0x23f   : > { %v621_v28 = vsub.f32 1.5, %v620_v27 }
 0x240   : > { %v740_v42 = vadd.f32 1.0, %v739_v38 }
 0x241   : > { %v622_v32 = vmul.f32 %v1121_v22, %v621_v28 }
 0x243   : > { %v626_v35 = vsel %vm625_vm14, %v1121_v22, %v622_v32 }
 0x244   : > { %v627_v36 = vmul.f32 %v626_v35, %v615_v33 }
 0x246   : > { %v629_v39 = vmul.f32 %v1102_v34, %v627_v36 }
 0x248   : > { %v631_v41 = vadd.f32 %v1103_v37, %v629_v39 }
 0x24a   : > { %v741_v43 = vmul.f32 %v740_v42, %v631_v41 }
 0x24c   : > { %775 = vmatmul.f32.vlgmr.msrb.gmra.mxu0 %v741_v43 }
 0x2c9   : > { %v776_v45 = vpop.f32.mrf.mxu0 }
 0x2ca   : > { %v777_v46 = vadd.f32 %v1107_v44, %v776_v45 }
 0x2cc   : > { %v779_v47 = vadd.f32 %v777_v46, %v631_v41 }
 0x2ce   : > { %780 = vadd.xlane.f32.xlu0 %v779_v47  ;;  %v783_v48 = vmul.f32 %v779_v47, %v779_v47 }
 0x2d0   : > { %784 = vadd.xlane.f32.xlu1 %v783_v48 }
 0x341   : > { %v781_v31 = vpop.xlane.xlu0 %780 }
 0x342   : > { %v782_v0 = vmul.f32 %v781_v31, %v1661_v40 }
 0x343   : > { %v785_v1 = vpop.xlane.xlu1 %784 }
 0x344   : > { %v787_v50 = vmul.f32 %v782_v0, %v782_v0  ;;  %v786_v51 = vmul.f32 %v785_v1, %v1661_v40  ;;  %v790_v61 = vsub.f32 %v779_v47, %v782_v0 }
 0x346   : > { %v788_v52 = vsub.f32 %v786_v51, %v787_v50 }
 0x348   : > { %v789_v53 = vmax.f32 %v788_v52, 0.0 }
 0x34a   : > { %v791_v54 = vadd.f32 1e-05, %v789_v53 }
 0x34c   : > { %1124 = vrsqrt.f32 %v791_v54  ;;  %vm798_vm0 = vweird.f32 %v791_v54 }
 0x352   : > { %v1125_v55 = vpop.eup %1124 }
 0x353   : > { %v793_v56 = vmul.f32 %v1125_v55, %v791_v54  ;;  %vm799_vm15 = vweird.f32 %v1125_v55 }
 0x354   : > { %vm800_vm1 = vmor %vm798_vm0, %vm799_vm15 }
 0x355   : > { %v794_v57 = vmul.f32 %v1125_v55, %v793_v56 }
 0x357   : > { %v795_v58 = vmul.f32 0.5, %v794_v57 }
 0x359   : > { %v796_v59 = vsub.f32 1.5, %v795_v58 }
 0x35b   : > { %v797_v60 = vmul.f32 %v1125_v55, %v796_v59 }
 0x35d   : > { %v801_v40 = vsel %vm800_vm1, %v1125_v55, %v797_v60 }
 0x35e   : > { %v802_v63 = vmul.f32 %v801_v40, %v790_v61 }
 0x360   : > { %v804_v3 = vmul.f32 %v1108_v62, %v802_v63 }
 0x362   : > { %v806_v4 = vadd.f32 %v1109_v2, %v804_v3 }
 0x364   : > { %807 = vst [vmem:[%s416_s11] sm:$0xff] %v806_v4 }
 0x365   : > { %1363 = shalt.err (!%p1360_p10)
}
 0x366   : > { %1018 = dma.vmem_to_hbm [thread:$0]  (%p1559_p0), %s822_s10, 128, %s824_s16, %s809_s8  }
 0x367 PF: > { %s835_s3 = sand.u32 1, %s1406_s24   ;;  %p1731_p12 = scmp.ge.s32.totalorder %s1418_s27, 2 }
 0x368   : > { %s836_s17 = scalar_lea.sflag [#allocation4], %s835_s3 }
 0x369   : > { %p1044_p5 = pnand %p1731_p12, %p1565_p6 }
 0x36b   : > { %p1045_p11 = pneg %p1044_p5 }
 0x36d   : > { %1401 = dma.done.wait (%p1045_p11), %s836_s17, 128  }
 0x36e   : > { %1403 = vsyncadd (%p1045_p11), %s836_s17, 4294967168  ;;  %s1732_s6 = sld [smem:[#allocation21_spill]]  ;;  %p25_p2 = scmp.ge.s32.totalorder %s1535_s20, 4  }
 0x36f   : > { %s1733_s24 = smov %s1410_s25  ;;  %s1734_s25 = smov %s1414_s26 }
 0x370   : > { %s1736_s27 = smov %s1535_s20  ;;  %27 = sbr.rel (!%p25_p2) target bundleno = 15 (0xf), region = 127 }
 0x374   : > { %s1735_s26 = smov %s1732_s6 }
 0x375   :  { %842 = vsyncpa [#allocation3], 1 }
 0x376   :  { %844 = vsyncpa [#allocation3 + $0x1], 1 }
 0x377   :  { %845 = vsyncpa [#allocation6], 1 }
 0x378   :  { %847 = vsyncpa [#allocation6 + $0x1], 1 }
 0x379   :  { %848 = vsyncpa [#allocation9], 1 }
 0x37a   :  { %849 = vsyncpa [#allocation12], 1 }
 0x37b   :  { %850 = vsyncpa [#allocation4], 1 }
 0x37c   :  { %852 = vsyncpa [#allocation4 + $0x1], 1 }

</bundles_post_ra>
